<compile_context>
chip_gen: v6e
topology: v6e:2x2x1
jax: 0.10.0
libtpu: 0.0.40
codegen_flags: <defaults>
</compile_context>

<pallas_src>
import jax
import jax.numpy as jnp
from jax import lax
from jax.experimental import pallas as pl
from jax.experimental.pallas import tpu as pltpu


def _round_up(x, m):
    return ((x + m - 1) // m) * m


# ----------------------------------------------------------------------------
# Pallas kernel: embedding selection + full GRU recurrence in one invocation.
# ----------------------------------------------------------------------------
def _gru_kernel(tok_ref, idx_ref, tgi_ref, whh_ref, bhh_ref, out_ref):
    # tok_ref : (T*Bp, 1) int32 -- token ids, time-major, 0 for padded rows
    # idx_ref : (Bp, 1)   int32 -- (lengths-1) mod T per row (-1 for pad rows)
    # tgi_ref : (Vp, G3)  f32   -- emb @ W_ih^T + b_ih, gates packed (r|z|n|0)
    # whh_ref : (H, G3)   f32   -- W_hh^T, same packed gate layout
    # bhh_ref : (1, G3)   f32
    # out_ref : (Bp, H)   f32
    TB = tok_ref.shape[0]
    Vp, G3 = tgi_ref.shape
    H = whh_ref.shape[0]
    Bp = out_ref.shape[0]
    T = TB // Bp

    # ---- Fused embedding lookup + input projection (off the serial chain) ---
    # One exact one-hot matmul produces gi for every (t, b) at once.
    tok = jnp.broadcast_to(tok_ref[...], (TB, Vp))                 # lane bcast
    onehot = (tok == lax.broadcasted_iota(jnp.int32, (TB, Vp), 1)
              ).astype(jnp.float32)
    gi_all = jnp.dot(onehot, tgi_ref[...],
                     preferred_element_type=jnp.float32)           # (TB, G3)

    # ---- Loop invariants: loaded once, resident in vregs for all T steps ----
    whh = whh_ref[...]                                             # 4 vregs
    bhh = bhh_ref[...]
    idx_b = jnp.broadcast_to(idx_ref[...], (Bp, H))                # int32

    h = jnp.zeros((Bp, H), jnp.float32)
    # Static unroll (T is small here).  For large T: partial unroll via
    # lax.fori_loop(..., unroll=k) with gi kept in a VMEM scratch.
    for t in range(T):
        gi = gi_all[t * Bp:(t + 1) * Bp, :]        # static 8-row sublane slice
        gh = jnp.dot(h, whh, preferred_element_type=jnp.float32) + bhh
        # Packed gates: lanes [0:H]=r, [H:2H]=z, [2H:3H]=n.
        # sigmoid via tanh: one EUP pass covers both r and z.
        rz = 0.5 * jnp.tanh(0.5 * (gi[:, :2 * H] + gh[:, :2 * H])) + 0.5
        r = rz[:, :H]
        z = rz[:, H:2 * H]
        n = jnp.tanh(gi[:, 2 * H:3 * H] + r * gh[:, 2 * H:3 * H])
        h_new = n + z * (h - n)                    # == (1-z)*n + z*h
        # Freeze once past the row's last valid timestep. idx = (len-1) % T,
        # so len==0 rows (idx == T-1) never freeze and return the hidden at
        # t == T-1, matching PyTorch's out[b, lengths[b]-1] negative wrap.
        h = jnp.where(idx_b >= t, h_new, h)

    out_ref[...] = h


# ----------------------------------------------------------------------------
# Wrapper: integer glue + weight folding/packing (no f32 activation round trip)
# ----------------------------------------------------------------------------
@jax.jit
def language_encoder_gru(instr, params):
    """instr: (B, T) int32 token ids (0 == padding). Returns (B, H) float32."""
    B, T = instr.shape
    emb = params["embedding"].astype(jnp.float32)       # (V, D)
    wih_T = params["wih_T"].astype(jnp.float32)         # (D, 3H)
    whh_T = params["whh_T"].astype(jnp.float32)         # (H, 3H)
    bih = params["bih"].astype(jnp.float32)             # (3H,)
    bhh = params["bhh"].astype(jnp.float32)             # (3H,)
    V, D = emb.shape
    H = whh_T.shape[0]

    Bp = _round_up(max(B, 8), 8)          # f32 sublanes
    Vp = _round_up(V, 128)                # one-hot lane width (small vocab)
    G3 = _round_up(3 * H, 128)            # packed gate slab
    # TODO(synk): for large vocab (Vp*G3 >> VMEM or one-hot >> vregs) gather
    # table_gi rows with a DMA gather instead of the one-hot matmul.

    lengths = (instr != 0).sum(axis=1).astype(jnp.int32)            # (B,)
    idx = ((lengths - 1) % T).astype(jnp.int32)                     # (B,)
    idx_p = jnp.full((Bp, 1), -1, jnp.int32).at[:B, 0].set(idx)

    # Time-major padded token ids (tiny int32 array; the only per-call input
    # besides idx_p — the f32 embedding work happens inside the kernel).
    tok_p = jnp.zeros((T, Bp), jnp.int32).at[:, :B].set(
        jnp.transpose(instr).astype(jnp.int32)).reshape(T * Bp, 1)

    # Weight-only folding: per-token input projection table (incl. b_ih),
    # gates packed contiguously into a single lane slab.
    table_gi = emb @ wih_T + bih[None, :]                           # (V, 3H)
    tgi_p = jnp.zeros((Vp, G3), jnp.float32).at[:V, :3 * H].set(table_gi)
    whh_p = jnp.zeros((H, G3), jnp.float32).at[:, :3 * H].set(whh_T)
    bhh_p = jnp.zeros((1, G3), jnp.float32).at[0, :3 * H].set(bhh)
    # Note: on v6e/v7x, casting tgi_p / whh_p (MXU operands) to bfloat16 while
    # keeping preferred_element_type=f32 and f32 gate math doubles MXU
    # throughput; kept f32 for exact parity with the f32 reference.

    def vmem_spec():
        return pl.BlockSpec(memory_space=pltpu.MemorySpace.VMEM)

    hidden_p = pl.pallas_call(
        _gru_kernel,
        out_shape=jax.ShapeDtypeStruct((Bp, H), jnp.float32),
        in_specs=[vmem_spec() for _ in range(5)],
        out_specs=vmem_spec(),
    )(tok_p, idx_p, tgi_p, whh_p, bhh_p)

    return hidden_p[:B, :]


# ----------------------------------------------------------------------------
# Pure-JAX reference (matches PyTorch nn.GRU gate equations) for validation.
# ----------------------------------------------------------------------------
def language_encoder_gru_ref(instr, params):
    B, T = instr.shape
    emb = jnp.take(params["embedding"], instr, axis=0).astype(jnp.float32)
    wih_T, whh_T = params["wih_T"], params["whh_T"]
    bih, bhh = params["bih"], params["bhh"]
    H = whh_T.shape[0]
    lengths = (instr != 0).sum(axis=1).astype(jnp.int32)

    def step(h, x_t):
        gi = x_t @ wih_T + bih
        gh = h @ whh_T + bhh
        i_r, i_z, i_n = gi[:, :H], gi[:, H:2 * H], gi[:, 2 * H:]
        h_r, h_z, h_n = gh[:, :H], gh[:, H:2 * H], gh[:, 2 * H:]
        r = jax.nn.sigmoid(i_r + h_r)
        z = jax.nn.sigmoid(i_z + h_z)
        n = jnp.tanh(i_n + r * h_n)
        h_new = (1.0 - z) * n + z * h
        return h_new, h_new

    h0 = jnp.zeros((B, H), jnp.float32)
    _, hs = lax.scan(step, h0, jnp.transpose(emb, (1, 0, 2)))   # (T, B, H)
    hs = jnp.transpose(hs, (1, 0, 2))                           # (B, T, H)
    idx = (lengths - 1) % T
    return hs[jnp.arange(B), idx]


# ----------------------------------------------------------------------------
# Deterministic parameter init (shapes from LanguageEncoder.__init__, gru path)
# ----------------------------------------------------------------------------
def init_params(key, vocab, instr_dim):
    H = instr_dim          # gru_dim == instr_dim for lang_model == 'gru'
    D = instr_dim
    k_emb, k_wih, k_whh, k_bih, k_bhh = jax.random.split(key, 5)
    scale = 1.0 / jnp.sqrt(H)
    return {
        "embedding": jax.random.normal(k_emb, (vocab, D), jnp.float32),
        # stored transposed for the kernel:  W_ih (3H, D) -> W_ih^T (D, 3H)
        "wih_T": jax.random.uniform(k_wih, (D, 3 * H), jnp.float32, -scale, scale),
        "whh_T": jax.random.uniform(k_whh, (H, 3 * H), jnp.float32, -scale, scale),
        "bih": jax.random.uniform(k_bih, (3 * H,), jnp.float32, -scale, scale),
        "bhh": jax.random.uniform(k_bhh, (3 * H,), jnp.float32, -scale, scale),
    }


if __name__ == "__main__":
    key = jax.random.PRNGKey(0)
    B, T, vocab, instr_dim = 4, 8, 20, 32

    k_tok, k_len, k_par = jax.random.split(key, 3)
    params = init_params(k_par, vocab, instr_dim)

    # Build left-aligned padded instructions with varying lengths (>= 1).
    lengths = jax.random.randint(k_len, (B,), 1, T + 1)
    tokens = jax.random.randint(k_tok, (B, T), 1, vocab)
    pos = jnp.arange(T)[None, :]
    instr = jnp.where(pos < lengths[:, None], tokens, 0).astype(jnp.int32)

    out = language_encoder_gru(instr, params)
    out = jax.block_until_ready(out)

    ref = language_encoder_gru_ref(instr, params)
    assert out.shape == (B, instr_dim)
    assert jnp.allclose(out, ref, rtol=1e-4, atol=1e-4), (
        f"max abs err {jnp.max(jnp.abs(out - ref))}")

    print("KERNEL_OK")
</pallas_src>

<mosaic_0001>
module attributes {stable_mosaic.version = 11 : i64} {
  func.func @_gru_kernel(%arg0: memref<64x1xi32, #tpu.memory_space<vmem>>, %arg1: memref<8x1xi32, #tpu.memory_space<vmem>>, %arg2: memref<128x128xf32, #tpu.memory_space<vmem>>, %arg3: memref<32x128xf32, #tpu.memory_space<vmem>>, %arg4: memref<1x128xf32, #tpu.memory_space<vmem>>, %arg5: memref<8x32xf32, #tpu.memory_space<vmem>>) attributes {dimension_semantics = [], scalar_prefetch = 0 : i64, scratch_operands = 0 : i64, tpu.core_type = #tpu.core_type<tc>} {
    %c0 = arith.constant 0 : index
    %c0_0 = arith.constant 0 : index
    %0 = vector.load %arg0[%c0, %c0_0] : memref<64x1xi32, #tpu.memory_space<vmem>>, vector<64x1xi32>
    %1 = vector.shape_cast %0 : vector<64x1xi32> to vector<64x1xi32>
    %2 = vector.broadcast %1 : vector<64x1xi32> to vector<64x128xi32>
    %3 = tpu.iota {dimensions = array<i32: 1>} : vector<64x128xi32>
    %4 = arith.cmpi eq, %2, %3 : vector<64x128xi32>
    %5 = arith.extui %4 : vector<64x128xi1> to vector<64x128xi32>
    %6 = arith.sitofp %5 : vector<64x128xi32> to vector<64x128xf32>
    %c0_1 = arith.constant 0 : index
    %c0_2 = arith.constant 0 : index
    %7 = vector.load %arg2[%c0_1, %c0_2] : memref<128x128xf32, #tpu.memory_space<vmem>>, vector<128x128xf32>
    %cst = arith.constant dense<0.000000e+00> : vector<64x128xf32>
    %8 = tpu.matmul %6, %7, %cst {dimension_numbers = #tpu.dot_dimension_numbers<[1], [0], [0], [1], [0, 0, 1, 1], [], []>} : vector<64x128xf32>, vector<128x128xf32>, vector<64x128xf32> -> vector<64x128xf32>
    %c0_3 = arith.constant 0 : index
    %c0_4 = arith.constant 0 : index
    %9 = vector.load %arg3[%c0_3, %c0_4] : memref<32x128xf32, #tpu.memory_space<vmem>>, vector<32x128xf32>
    %c0_5 = arith.constant 0 : index
    %c0_6 = arith.constant 0 : index
    %10 = vector.load %arg4[%c0_5, %c0_6] : memref<1x128xf32, #tpu.memory_space<vmem>>, vector<1x128xf32>
    %c0_7 = arith.constant 0 : index
    %c0_8 = arith.constant 0 : index
    %11 = vector.load %arg1[%c0_7, %c0_8] : memref<8x1xi32, #tpu.memory_space<vmem>>, vector<8x1xi32>
    %12 = vector.shape_cast %11 : vector<8x1xi32> to vector<8x1xi32>
    %13 = vector.broadcast %12 : vector<8x1xi32> to vector<8x32xi32>
    %cst_9 = arith.constant 0.000000e+00 : f32
    %14 = vector.broadcast %cst_9 : f32 to vector<8x32xf32>
    %15 = vector.extract_strided_slice %8 {offsets = [0, 0], sizes = [8, 128], strides = [1, 1]} : vector<64x128xf32> to vector<8x128xf32>
    %cst_10 = arith.constant dense<0.000000e+00> : vector<8x128xf32>
    %16 = tpu.matmul %14, %9, %cst_10 {dimension_numbers = #tpu.dot_dimension_numbers<[1], [0], [0], [1], [0, 0, 1, 1], [], []>} : vector<8x32xf32>, vector<32x128xf32>, vector<8x128xf32> -> vector<8x128xf32>
    %17 = vector.broadcast %10 : vector<1x128xf32> to vector<8x128xf32>
    %18 = arith.addf %16, %17 : vector<8x128xf32>
    %19 = vector.extract_strided_slice %15 {offsets = [0, 0], sizes = [8, 64], strides = [1, 1]} : vector<8x128xf32> to vector<8x64xf32>
    %20 = vector.extract_strided_slice %18 {offsets = [0, 0], sizes = [8, 64], strides = [1, 1]} : vector<8x128xf32> to vector<8x64xf32>
    %21 = arith.addf %19, %20 : vector<8x64xf32>
    %cst_11 = arith.constant 5.000000e-01 : f32
    %22 = vector.broadcast %cst_11 : f32 to vector<8x64xf32>
    %23 = arith.mulf %22, %21 : vector<8x64xf32>
    %24 = math.tanh %23 : vector<8x64xf32>
    %cst_12 = arith.constant 5.000000e-01 : f32
    %25 = vector.broadcast %cst_12 : f32 to vector<8x64xf32>
    %26 = arith.mulf %25, %24 : vector<8x64xf32>
    %cst_13 = arith.constant 5.000000e-01 : f32
    %27 = vector.broadcast %cst_13 : f32 to vector<8x64xf32>
    %28 = arith.addf %26, %27 : vector<8x64xf32>
    %29 = vector.extract_strided_slice %28 {offsets = [0, 0], sizes = [8, 32], strides = [1, 1]} : vector<8x64xf32> to vector<8x32xf32>
    %30 = vector.extract_strided_slice %28 {offsets = [0, 32], sizes = [8, 32], strides = [1, 1]} : vector<8x64xf32> to vector<8x32xf32>
    %31 = vector.extract_strided_slice %15 {offsets = [0, 64], sizes = [8, 32], strides = [1, 1]} : vector<8x128xf32> to vector<8x32xf32>
    %32 = vector.extract_strided_slice %18 {offsets = [0, 64], sizes = [8, 32], strides = [1, 1]} : vector<8x128xf32> to vector<8x32xf32>
    %33 = arith.mulf %29, %32 : vector<8x32xf32>
    %34 = arith.addf %31, %33 : vector<8x32xf32>
    %35 = math.tanh %34 : vector<8x32xf32>
    %36 = arith.subf %14, %35 : vector<8x32xf32>
    %37 = arith.mulf %30, %36 : vector<8x32xf32>
    %38 = arith.addf %35, %37 : vector<8x32xf32>
    %c0_i32 = arith.constant 0 : i32
    %39 = vector.broadcast %c0_i32 : i32 to vector<8x32xi32>
    %40 = arith.cmpi sge, %13, %39 : vector<8x32xi32>
    %41 = arith.select %40, %38, %14 : vector<8x32xi1>, vector<8x32xf32>
    %42 = vector.extract_strided_slice %8 {offsets = [8, 0], sizes = [8, 128], strides = [1, 1]} : vector<64x128xf32> to vector<8x128xf32>
    %cst_14 = arith.constant dense<0.000000e+00> : vector<8x128xf32>
    %43 = tpu.matmul %41, %9, %cst_14 {dimension_numbers = #tpu.dot_dimension_numbers<[1], [0], [0], [1], [0, 0, 1, 1], [], []>} : vector<8x32xf32>, vector<32x128xf32>, vector<8x128xf32> -> vector<8x128xf32>
    %44 = vector.broadcast %10 : vector<1x128xf32> to vector<8x128xf32>
    %45 = arith.addf %43, %44 : vector<8x128xf32>
    %46 = vector.extract_strided_slice %42 {offsets = [0, 0], sizes = [8, 64], strides = [1, 1]} : vector<8x128xf32> to vector<8x64xf32>
    %47 = vector.extract_strided_slice %45 {offsets = [0, 0], sizes = [8, 64], strides = [1, 1]} : vector<8x128xf32> to vector<8x64xf32>
    %48 = arith.addf %46, %47 : vector<8x64xf32>
    %cst_15 = arith.constant 5.000000e-01 : f32
    %49 = vector.broadcast %cst_15 : f32 to vector<8x64xf32>
    %50 = arith.mulf %49, %48 : vector<8x64xf32>
    %51 = math.tanh %50 : vector<8x64xf32>
    %cst_16 = arith.constant 5.000000e-01 : f32
    %52 = vector.broadcast %cst_16 : f32 to vector<8x64xf32>
    %53 = arith.mulf %52, %51 : vector<8x64xf32>
    %cst_17 = arith.constant 5.000000e-01 : f32
    %54 = vector.broadcast %cst_17 : f32 to vector<8x64xf32>
    %55 = arith.addf %53, %54 : vector<8x64xf32>
    %56 = vector.extract_strided_slice %55 {offsets = [0, 0], sizes = [8, 32], strides = [1, 1]} : vector<8x64xf32> to vector<8x32xf32>
    %57 = vector.extract_strided_slice %55 {offsets = [0, 32], sizes = [8, 32], strides = [1, 1]} : vector<8x64xf32> to vector<8x32xf32>
    %58 = vector.extract_strided_slice %42 {offsets = [0, 64], sizes = [8, 32], strides = [1, 1]} : vector<8x128xf32> to vector<8x32xf32>
    %59 = vector.extract_strided_slice %45 {offsets = [0, 64], sizes = [8, 32], strides = [1, 1]} : vector<8x128xf32> to vector<8x32xf32>
    %60 = arith.mulf %56, %59 : vector<8x32xf32>
    %61 = arith.addf %58, %60 : vector<8x32xf32>
    %62 = math.tanh %61 : vector<8x32xf32>
    %63 = arith.subf %41, %62 : vector<8x32xf32>
    %64 = arith.mulf %57, %63 : vector<8x32xf32>
    %65 = arith.addf %62, %64 : vector<8x32xf32>
    %c1_i32 = arith.constant 1 : i32
    %66 = vector.broadcast %c1_i32 : i32 to vector<8x32xi32>
    %67 = arith.cmpi sge, %13, %66 : vector<8x32xi32>
    %68 = arith.select %67, %65, %41 : vector<8x32xi1>, vector<8x32xf32>
    %69 = vector.extract_strided_slice %8 {offsets = [16, 0], sizes = [8, 128], strides = [1, 1]} : vector<64x128xf32> to vector<8x128xf32>
    %cst_18 = arith.constant dense<0.000000e+00> : vector<8x128xf32>
    %70 = tpu.matmul %68, %9, %cst_18 {dimension_numbers = #tpu.dot_dimension_numbers<[1], [0], [0], [1], [0, 0, 1, 1], [], []>} : vector<8x32xf32>, vector<32x128xf32>, vector<8x128xf32> -> vector<8x128xf32>
    %71 = vector.broadcast %10 : vector<1x128xf32> to vector<8x128xf32>
    %72 = arith.addf %70, %71 : vector<8x128xf32>
    %73 = vector.extract_strided_slice %69 {offsets = [0, 0], sizes = [8, 64], strides = [1, 1]} : vector<8x128xf32> to vector<8x64xf32>
    %74 = vector.extract_strided_slice %72 {offsets = [0, 0], sizes = [8, 64], strides = [1, 1]} : vector<8x128xf32> to vector<8x64xf32>
    %75 = arith.addf %73, %74 : vector<8x64xf32>
    %cst_19 = arith.constant 5.000000e-01 : f32
    %76 = vector.broadcast %cst_19 : f32 to vector<8x64xf32>
    %77 = arith.mulf %76, %75 : vector<8x64xf32>
    %78 = math.tanh %77 : vector<8x64xf32>
    %cst_20 = arith.constant 5.000000e-01 : f32
    %79 = vector.broadcast %cst_20 : f32 to vector<8x64xf32>
    %80 = arith.mulf %79, %78 : vector<8x64xf32>
    %cst_21 = arith.constant 5.000000e-01 : f32
    %81 = vector.broadcast %cst_21 : f32 to vector<8x64xf32>
    %82 = arith.addf %80, %81 : vector<8x64xf32>
    %83 = vector.extract_strided_slice %82 {offsets = [0, 0], sizes = [8, 32], strides = [1, 1]} : vector<8x64xf32> to vector<8x32xf32>
    %84 = vector.extract_strided_slice %82 {offsets = [0, 32], sizes = [8, 32], strides = [1, 1]} : vector<8x64xf32> to vector<8x32xf32>
    %85 = vector.extract_strided_slice %69 {offsets = [0, 64], sizes = [8, 32], strides = [1, 1]} : vector<8x128xf32> to vector<8x32xf32>
    %86 = vector.extract_strided_slice %72 {offsets = [0, 64], sizes = [8, 32], strides = [1, 1]} : vector<8x128xf32> to vector<8x32xf32>
    %87 = arith.mulf %83, %86 : vector<8x32xf32>
    %88 = arith.addf %85, %87 : vector<8x32xf32>
    %89 = math.tanh %88 : vector<8x32xf32>
    %90 = arith.subf %68, %89 : vector<8x32xf32>
    %91 = arith.mulf %84, %90 : vector<8x32xf32>
    %92 = arith.addf %89, %91 : vector<8x32xf32>
    %c2_i32 = arith.constant 2 : i32
    %93 = vector.broadcast %c2_i32 : i32 to vector<8x32xi32>
    %94 = arith.cmpi sge, %13, %93 : vector<8x32xi32>
    %95 = arith.select %94, %92, %68 : vector<8x32xi1>, vector<8x32xf32>
    %96 = vector.extract_strided_slice %8 {offsets = [24, 0], sizes = [8, 128], strides = [1, 1]} : vector<64x128xf32> to vector<8x128xf32>
    %cst_22 = arith.constant dense<0.000000e+00> : vector<8x128xf32>
    %97 = tpu.matmul %95, %9, %cst_22 {dimension_numbers = #tpu.dot_dimension_numbers<[1], [0], [0], [1], [0, 0, 1, 1], [], []>} : vector<8x32xf32>, vector<32x128xf32>, vector<8x128xf32> -> vector<8x128xf32>
    %98 = vector.broadcast %10 : vector<1x128xf32> to vector<8x128xf32>
    %99 = arith.addf %97, %98 : vector<8x128xf32>
    %100 = vector.extract_strided_slice %96 {offsets = [0, 0], sizes = [8, 64], strides = [1, 1]} : vector<8x128xf32> to vector<8x64xf32>
    %101 = vector.extract_strided_slice %99 {offsets = [0, 0], sizes = [8, 64], strides = [1, 1]} : vector<8x128xf32> to vector<8x64xf32>
    %102 = arith.addf %100, %101 : vector<8x64xf32>
    %cst_23 = arith.constant 5.000000e-01 : f32
    %103 = vector.broadcast %cst_23 : f32 to vector<8x64xf32>
    %104 = arith.mulf %103, %102 : vector<8x64xf32>
    %105 = math.tanh %104 : vector<8x64xf32>
    %cst_24 = arith.constant 5.000000e-01 : f32
    %106 = vector.broadcast %cst_24 : f32 to vector<8x64xf32>
    %107 = arith.mulf %106, %105 : vector<8x64xf32>
    %cst_25 = arith.constant 5.000000e-01 : f32
    %108 = vector.broadcast %cst_25 : f32 to vector<8x64xf32>
    %109 = arith.addf %107, %108 : vector<8x64xf32>
    %110 = vector.extract_strided_slice %109 {offsets = [0, 0], sizes = [8, 32], strides = [1, 1]} : vector<8x64xf32> to vector<8x32xf32>
    %111 = vector.extract_strided_slice %109 {offsets = [0, 32], sizes = [8, 32], strides = [1, 1]} : vector<8x64xf32> to vector<8x32xf32>
    %112 = vector.extract_strided_slice %96 {offsets = [0, 64], sizes = [8, 32], strides = [1, 1]} : vector<8x128xf32> to vector<8x32xf32>
    %113 = vector.extract_strided_slice %99 {offsets = [0, 64], sizes = [8, 32], strides = [1, 1]} : vector<8x128xf32> to vector<8x32xf32>
    %114 = arith.mulf %110, %113 : vector<8x32xf32>
    %115 = arith.addf %112, %114 : vector<8x32xf32>
    %116 = math.tanh %115 : vector<8x32xf32>
    %117 = arith.subf %95, %116 : vector<8x32xf32>
    %118 = arith.mulf %111, %117 : vector<8x32xf32>
    %119 = arith.addf %116, %118 : vector<8x32xf32>
    %c3_i32 = arith.constant 3 : i32
    %120 = vector.broadcast %c3_i32 : i32 to vector<8x32xi32>
    %121 = arith.cmpi sge, %13, %120 : vector<8x32xi32>
    %122 = arith.select %121, %119, %95 : vector<8x32xi1>, vector<8x32xf32>
    %123 = vector.extract_strided_slice %8 {offsets = [32, 0], sizes = [8, 128], strides = [1, 1]} : vector<64x128xf32> to vector<8x128xf32>
    %cst_26 = arith.constant dense<0.000000e+00> : vector<8x128xf32>
    %124 = tpu.matmul %122, %9, %cst_26 {dimension_numbers = #tpu.dot_dimension_numbers<[1], [0], [0], [1], [0, 0, 1, 1], [], []>} : vector<8x32xf32>, vector<32x128xf32>, vector<8x128xf32> -> vector<8x128xf32>
    %125 = vector.broadcast %10 : vector<1x128xf32> to vector<8x128xf32>
    %126 = arith.addf %124, %125 : vector<8x128xf32>
    %127 = vector.extract_strided_slice %123 {offsets = [0, 0], sizes = [8, 64], strides = [1, 1]} : vector<8x128xf32> to vector<8x64xf32>
    %128 = vector.extract_strided_slice %126 {offsets = [0, 0], sizes = [8, 64], strides = [1, 1]} : vector<8x128xf32> to vector<8x64xf32>
    %129 = arith.addf %127, %128 : vector<8x64xf32>
    %cst_27 = arith.constant 5.000000e-01 : f32
    %130 = vector.broadcast %cst_27 : f32 to vector<8x64xf32>
    %131 = arith.mulf %130, %129 : vector<8x64xf32>
    %132 = math.tanh %131 : vector<8x64xf32>
    %cst_28 = arith.constant 5.000000e-01 : f32
    %133 = vector.broadcast %cst_28 : f32 to vector<8x64xf32>
    %134 = arith.mulf %133, %132 : vector<8x64xf32>
    %cst_29 = arith.constant 5.000000e-01 : f32
    %135 = vector.broadcast %cst_29 : f32 to vector<8x64xf32>
    %136 = arith.addf %134, %135 : vector<8x64xf32>
    %137 = vector.extract_strided_slice %136 {offsets = [0, 0], sizes = [8, 32], strides = [1, 1]} : vector<8x64xf32> to vector<8x32xf32>
    %138 = vector.extract_strided_slice %136 {offsets = [0, 32], sizes = [8, 32], strides = [1, 1]} : vector<8x64xf32> to vector<8x32xf32>
    %139 = vector.extract_strided_slice %123 {offsets = [0, 64], sizes = [8, 32], strides = [1, 1]} : vector<8x128xf32> to vector<8x32xf32>
    %140 = vector.extract_strided_slice %126 {offsets = [0, 64], sizes = [8, 32], strides = [1, 1]} : vector<8x128xf32> to vector<8x32xf32>
    %141 = arith.mulf %137, %140 : vector<8x32xf32>
    %142 = arith.addf %139, %141 : vector<8x32xf32>
    %143 = math.tanh %142 : vector<8x32xf32>
    %144 = arith.subf %122, %143 : vector<8x32xf32>
    %145 = arith.mulf %138, %144 : vector<8x32xf32>
    %146 = arith.addf %143, %145 : vector<8x32xf32>
    %c4_i32 = arith.constant 4 : i32
    %147 = vector.broadcast %c4_i32 : i32 to vector<8x32xi32>
    %148 = arith.cmpi sge, %13, %147 : vector<8x32xi32>
    %149 = arith.select %148, %146, %122 : vector<8x32xi1>, vector<8x32xf32>
    %150 = vector.extract_strided_slice %8 {offsets = [40, 0], sizes = [8, 128], strides = [1, 1]} : vector<64x128xf32> to vector<8x128xf32>
    %cst_30 = arith.constant dense<0.000000e+00> : vector<8x128xf32>
    %151 = tpu.matmul %149, %9, %cst_30 {dimension_numbers = #tpu.dot_dimension_numbers<[1], [0], [0], [1], [0, 0, 1, 1], [], []>} : vector<8x32xf32>, vector<32x128xf32>, vector<8x128xf32> -> vector<8x128xf32>
    %152 = vector.broadcast %10 : vector<1x128xf32> to vector<8x128xf32>
    %153 = arith.addf %151, %152 : vector<8x128xf32>
    %154 = vector.extract_strided_slice %150 {offsets = [0, 0], sizes = [8, 64], strides = [1, 1]} : vector<8x128xf32> to vector<8x64xf32>
    %155 = vector.extract_strided_slice %153 {offsets = [0, 0], sizes = [8, 64], strides = [1, 1]} : vector<8x128xf32> to vector<8x64xf32>
    %156 = arith.addf %154, %155 : vector<8x64xf32>
    %cst_31 = arith.constant 5.000000e-01 : f32
    %157 = vector.broadcast %cst_31 : f32 to vector<8x64xf32>
    %158 = arith.mulf %157, %156 : vector<8x64xf32>
    %159 = math.tanh %158 : vector<8x64xf32>
    %cst_32 = arith.constant 5.000000e-01 : f32
    %160 = vector.broadcast %cst_32 : f32 to vector<8x64xf32>
    %161 = arith.mulf %160, %159 : vector<8x64xf32>
    %cst_33 = arith.constant 5.000000e-01 : f32
    %162 = vector.broadcast %cst_33 : f32 to vector<8x64xf32>
    %163 = arith.addf %161, %162 : vector<8x64xf32>
    %164 = vector.extract_strided_slice %163 {offsets = [0, 0], sizes = [8, 32], strides = [1, 1]} : vector<8x64xf32> to vector<8x32xf32>
    %165 = vector.extract_strided_slice %163 {offsets = [0, 32], sizes = [8, 32], strides = [1, 1]} : vector<8x64xf32> to vector<8x32xf32>
    %166 = vector.extract_strided_slice %150 {offsets = [0, 64], sizes = [8, 32], strides = [1, 1]} : vector<8x128xf32> to vector<8x32xf32>
    %167 = vector.extract_strided_slice %153 {offsets = [0, 64], sizes = [8, 32], strides = [1, 1]} : vector<8x128xf32> to vector<8x32xf32>
    %168 = arith.mulf %164, %167 : vector<8x32xf32>
    %169 = arith.addf %166, %168 : vector<8x32xf32>
    %170 = math.tanh %169 : vector<8x32xf32>
    %171 = arith.subf %149, %170 : vector<8x32xf32>
    %172 = arith.mulf %165, %171 : vector<8x32xf32>
    %173 = arith.addf %170, %172 : vector<8x32xf32>
    %c5_i32 = arith.constant 5 : i32
    %174 = vector.broadcast %c5_i32 : i32 to vector<8x32xi32>
    %175 = arith.cmpi sge, %13, %174 : vector<8x32xi32>
    %176 = arith.select %175, %173, %149 : vector<8x32xi1>, vector<8x32xf32>
    %177 = vector.extract_strided_slice %8 {offsets = [48, 0], sizes = [8, 128], strides = [1, 1]} : vector<64x128xf32> to vector<8x128xf32>
    %cst_34 = arith.constant dense<0.000000e+00> : vector<8x128xf32>
    %178 = tpu.matmul %176, %9, %cst_34 {dimension_numbers = #tpu.dot_dimension_numbers<[1], [0], [0], [1], [0, 0, 1, 1], [], []>} : vector<8x32xf32>, vector<32x128xf32>, vector<8x128xf32> -> vector<8x128xf32>
    %179 = vector.broadcast %10 : vector<1x128xf32> to vector<8x128xf32>
    %180 = arith.addf %178, %179 : vector<8x128xf32>
    %181 = vector.extract_strided_slice %177 {offsets = [0, 0], sizes = [8, 64], strides = [1, 1]} : vector<8x128xf32> to vector<8x64xf32>
    %182 = vector.extract_strided_slice %180 {offsets = [0, 0], sizes = [8, 64], strides = [1, 1]} : vector<8x128xf32> to vector<8x64xf32>
    %183 = arith.addf %181, %182 : vector<8x64xf32>
    %cst_35 = arith.constant 5.000000e-01 : f32
    %184 = vector.broadcast %cst_35 : f32 to vector<8x64xf32>
    %185 = arith.mulf %184, %183 : vector<8x64xf32>
    %186 = math.tanh %185 : vector<8x64xf32>
    %cst_36 = arith.constant 5.000000e-01 : f32
    %187 = vector.broadcast %cst_36 : f32 to vector<8x64xf32>
    %188 = arith.mulf %187, %186 : vector<8x64xf32>
    %cst_37 = arith.constant 5.000000e-01 : f32
    %189 = vector.broadcast %cst_37 : f32 to vector<8x64xf32>
    %190 = arith.addf %188, %189 : vector<8x64xf32>
    %191 = vector.extract_strided_slice %190 {offsets = [0, 0], sizes = [8, 32], strides = [1, 1]} : vector<8x64xf32> to vector<8x32xf32>
    %192 = vector.extract_strided_slice %190 {offsets = [0, 32], sizes = [8, 32], strides = [1, 1]} : vector<8x64xf32> to vector<8x32xf32>
    %193 = vector.extract_strided_slice %177 {offsets = [0, 64], sizes = [8, 32], strides = [1, 1]} : vector<8x128xf32> to vector<8x32xf32>
    %194 = vector.extract_strided_slice %180 {offsets = [0, 64], sizes = [8, 32], strides = [1, 1]} : vector<8x128xf32> to vector<8x32xf32>
    %195 = arith.mulf %191, %194 : vector<8x32xf32>
    %196 = arith.addf %193, %195 : vector<8x32xf32>
    %197 = math.tanh %196 : vector<8x32xf32>
    %198 = arith.subf %176, %197 : vector<8x32xf32>
    %199 = arith.mulf %192, %198 : vector<8x32xf32>
    %200 = arith.addf %197, %199 : vector<8x32xf32>
    %c6_i32 = arith.constant 6 : i32
    %201 = vector.broadcast %c6_i32 : i32 to vector<8x32xi32>
    %202 = arith.cmpi sge, %13, %201 : vector<8x32xi32>
    %203 = arith.select %202, %200, %176 : vector<8x32xi1>, vector<8x32xf32>
    %204 = vector.extract_strided_slice %8 {offsets = [56, 0], sizes = [8, 128], strides = [1, 1]} : vector<64x128xf32> to vector<8x128xf32>
    %cst_38 = arith.constant dense<0.000000e+00> : vector<8x128xf32>
    %205 = tpu.matmul %203, %9, %cst_38 {dimension_numbers = #tpu.dot_dimension_numbers<[1], [0], [0], [1], [0, 0, 1, 1], [], []>} : vector<8x32xf32>, vector<32x128xf32>, vector<8x128xf32> -> vector<8x128xf32>
    %206 = vector.broadcast %10 : vector<1x128xf32> to vector<8x128xf32>
    %207 = arith.addf %205, %206 : vector<8x128xf32>
    %208 = vector.extract_strided_slice %204 {offsets = [0, 0], sizes = [8, 64], strides = [1, 1]} : vector<8x128xf32> to vector<8x64xf32>
    %209 = vector.extract_strided_slice %207 {offsets = [0, 0], sizes = [8, 64], strides = [1, 1]} : vector<8x128xf32> to vector<8x64xf32>
    %210 = arith.addf %208, %209 : vector<8x64xf32>
    %cst_39 = arith.constant 5.000000e-01 : f32
    %211 = vector.broadcast %cst_39 : f32 to vector<8x64xf32>
    %212 = arith.mulf %211, %210 : vector<8x64xf32>
    %213 = math.tanh %212 : vector<8x64xf32>
    %cst_40 = arith.constant 5.000000e-01 : f32
    %214 = vector.broadcast %cst_40 : f32 to vector<8x64xf32>
    %215 = arith.mulf %214, %213 : vector<8x64xf32>
    %cst_41 = arith.constant 5.000000e-01 : f32
    %216 = vector.broadcast %cst_41 : f32 to vector<8x64xf32>
    %217 = arith.addf %215, %216 : vector<8x64xf32>
    %218 = vector.extract_strided_slice %217 {offsets = [0, 0], sizes = [8, 32], strides = [1, 1]} : vector<8x64xf32> to vector<8x32xf32>
    %219 = vector.extract_strided_slice %217 {offsets = [0, 32], sizes = [8, 32], strides = [1, 1]} : vector<8x64xf32> to vector<8x32xf32>
    %220 = vector.extract_strided_slice %204 {offsets = [0, 64], sizes = [8, 32], strides = [1, 1]} : vector<8x128xf32> to vector<8x32xf32>
    %221 = vector.extract_strided_slice %207 {offsets = [0, 64], sizes = [8, 32], strides = [1, 1]} : vector<8x128xf32> to vector<8x32xf32>
    %222 = arith.mulf %218, %221 : vector<8x32xf32>
    %223 = arith.addf %220, %222 : vector<8x32xf32>
    %224 = math.tanh %223 : vector<8x32xf32>
    %225 = arith.subf %203, %224 : vector<8x32xf32>
    %226 = arith.mulf %219, %225 : vector<8x32xf32>
    %227 = arith.addf %224, %226 : vector<8x32xf32>
    %c7_i32 = arith.constant 7 : i32
    %228 = vector.broadcast %c7_i32 : i32 to vector<8x32xi32>
    %229 = arith.cmpi sge, %13, %228 : vector<8x32xi32>
    %230 = arith.select %229, %227, %203 : vector<8x32xi1>, vector<8x32xf32>
    %c0_42 = arith.constant 0 : index
    %c0_43 = arith.constant 0 : index
    %231 = vector.load %arg5[%c0_42, %c0_43] : memref<8x32xf32, #tpu.memory_space<vmem>>, vector<8x32xf32>
    tpu.vector_store %arg5[%c0_42, %c0_43], %230 {strides = array<i32>} : memref<8x32xf32, #tpu.memory_space<vmem>>, vector<8x32xf32>,
    return
  }
}

</mosaic_0001>

<bundles_post_ra>
// kernel: language_encoder_gru.1
= control target key start
LH: loop header
LB: loop body
LE: loop exit
PB: predicated region body
PF: predicated region fallthrough
CT: control target
= control target key end

     0   :  { %v1315_v0 = vmov 0   ;;  %v1316_v2 = vmov 0.0   ;;  %vm1317_vm0 = vmmov 0   ;;  %v52_v24 = vlaneseq  ;;  %s1319_s12 = smov 64   ;;  %s1320_s13 = smov 96   ;;  %s1624_s0 = inlined_call_operand.vmem [shape: s32[64,1], index: 0, kind: input, shape index: {}]   ;;  %s1625_s3 = inlined_call_operand.vmem [shape: f32[32,128], index: 3, kind: input, shape index: {}]   ;;  %s1626_s2 = inlined_call_operand.vmem [shape: f32[128,128], index: 2, kind: input, shape index: {}]   ;;  %s1627_s4 = inlined_call_operand.vmem [shape: f32[1,128], index: 4, kind: input, shape index: {}]   ;;  %s1628_s1 = inlined_call_operand.vmem [shape: s32[8,1], index: 1, kind: input, shape index: {}]   ;;  %s1629_s5 = inlined_call_operand.vmem [shape: f32[8,32], index: 5, kind: output, shape index: {}]  }
   0x1   :  { %1281 = vset.pattern.permute.xlu0 %v1315_v0  ;;  %v20_v1 = vld [vmem:[%s1624_s0] sm:$0xff]  ;;  %1186 = vmatprep.subr.mxu1 %v1316_v2  ;;  %v1359_v3 = vld [vmem:[%s1625_s3 + $0x18] sm:$0xff]  ;;  %v1365_v4 = vld [vmem:[%s1625_s3 + $0x10] sm:$0xff]  ;;  %v1318_v27 = vmov 1.0   ;;  %s1321_s14 = smov 32   ;;  %vm214_vm4 = vcmask 261120  }
   0x2   :  { %29 = vperm.xlu0 %1281, %v20_v1   ;;  %1187 = vmatpush3.msra.mxu1 %v1359_v3  ;;  %v21_v5 = vld [vmem:[%s1624_s0 + $0x8] sm:$0xff]  ;;  %v93_v7 = vld [vmem:[%s1626_s2 + $0x78] sm:$0xff]  ;;  %v92_v8 = vld [vmem:[%s1626_s2 + $0x70] sm:$0xff]  ;;  %v1449_v25 = vand.u32 127, %v52_v24 }
   0x3   :  { %1188 = vmatprep.subr.mxu1 %v1316_v2  ;;  %v1374_v6 = vld [vmem:[%s1625_s3 + $0x8] sm:$0xff]  ;;  %1194 = vmatprep.mubr.msk.f32.mxu1 %vm1317_vm0, %v1316_v2  ;;  %v1389_v9 = vld [vmem:[%s1625_s3] sm:$0xff]  ;;  %v89_v12 = vld [vmem:[%s1626_s2 + $0x58] sm:$0xff] }
   0x4   :  { %1189 = vmatpush3.msra.mxu1 %v1365_v4  ;;  %1142 = vmatprep.subr.mxu0 %v93_v7  ;;  %v91_v10 = vld [vmem:[%s1626_s2 + $0x68] sm:$0xff]  ;;  %v90_v11 = vld [vmem:[%s1626_s2 + $0x60] sm:$0xff]  ;;  %v88_v13 = vld [vmem:[%s1626_s2 + $0x50] sm:$0xff] }
   0x5   :  { %1190 = vmatprep.subr.mxu1 %v1316_v2  ;;  %1143 = vmatpush3.msra.mxu0 %v93_v7  ;;  %v87_v14 = vld [vmem:[%s1626_s2 + $0x48] sm:$0xff]  ;;  %v86_v15 = vld [vmem:[%s1626_s2 + $0x40] sm:$0xff]  ;;  %v85_v16 = vld [vmem:[%s1626_s2 + $0x38] sm:$0xff] }
   0x6   :  { %32 = vperm.xlu0 %1281, %v21_v5   ;;  %1191 = vmatpush3.msra.mxu1 %v1374_v6  ;;  %v84_v17 = vld [vmem:[%s1626_s2 + $0x30] sm:$0xff]  ;;  %v83_v18 = vld [vmem:[%s1626_s2 + $0x28] sm:$0xff]  ;;  %v82_v19 = vld [vmem:[%s1626_s2 + $0x20] sm:$0xff] }
   0x7   :  { %1192 = vmatprep.subr.mxu1 %v1316_v2  ;;  %1144 = vmatprep.subr.mxu0 %v92_v8  ;;  %v81_v20 = vld [vmem:[%s1626_s2 + $0x18] sm:$0xff]  ;;  %v80_v21 = vld [vmem:[%s1626_s2 + $0x10] sm:$0xff]  ;;  %v79_v22 = vld [vmem:[%s1626_s2 + $0x8] sm:$0xff] }
   0x8   :  { %1193 = vmatpush3.msra.mxu1 %v1389_v9  ;;  %1145 = vmatpush3.msra.mxu0 %v92_v8  ;;  %v78_v23 = vld [vmem:[%s1626_s2] sm:$0xff] }
   0x9   :  { %1195 = vmatmul.mubr.f32.vlgmr.msra.gmra.mxu1 %v1316_v2  ;;  %1146 = vmatprep.subr.mxu0 %v91_v10  ;;  %v1466_v29 = vld [vmem:[%s1627_s4] ss:$0 sm:$0xff] }
   0xa   :  { %1147 = vmatpush3.msra.mxu0 %v91_v10  ;;  %1282 = vset.pattern.permute.xlu1 %v1315_v0  ;;  %v204_v42 = vld [vmem:[%s1628_s1] sm:$0xff] }
   0xb   :  { %1148 = vmatprep.subr.mxu0 %v90_v11  ;;  %1197 = vmatprep.subr.mxu1 %v1316_v2 }
   0xc   :  { %1149 = vmatpush3.msra.mxu0 %v90_v11  ;;  %1198 = vmatpush3.msra.mxu1 %v1359_v3  ;;  %v22_v11 = vld [vmem:[%s1624_s0 + $0x10] sm:$0xff] }
   0xd   :  { %1150 = vmatprep.subr.mxu0 %v89_v12  ;;  %1199 = vmatprep.subr.mxu1 %v1316_v2 }
   0xe   :  { %1151 = vmatpush3.msra.mxu0 %v89_v12  ;;  %1200 = vmatpush3.msra.mxu1 %v1365_v4 }
   0xf   :  { %1152 = vmatprep.subr.mxu0 %v88_v13  ;;  %1201 = vmatprep.subr.mxu1 %v1316_v2 }
  0x10   :  { %1153 = vmatpush3.msra.mxu0 %v88_v13  ;;  %1202 = vmatpush3.msra.mxu1 %v1374_v6 }
  0x11   :  { %1154 = vmatprep.subr.mxu0 %v87_v14  ;;  %1203 = vmatprep.subr.mxu1 %v1316_v2 }
  0x12   :  { %1155 = vmatpush3.msra.mxu0 %v87_v14  ;;  %1204 = vmatpush3.msra.mxu1 %v1389_v9 }
  0x13   :  { %1156 = vmatprep.subr.mxu0 %v86_v15  ;;  %1205 = vmatprep.mubr.msk.f32.mxu1 %vm1317_vm0, %v1316_v2 }
  0x14   :  { %1157 = vmatpush3.msra.mxu0 %v86_v15  ;;  %1208 = vmatprep.subr.mxu1 %v1316_v2  ;;  %v23_v15 = vld [vmem:[%s1624_s0 + $0x18] sm:$0xff] }
  0x15   :  { %1158 = vmatprep.subr.mxu0 %v85_v16 }
  0x16   :  { %1159 = vmatpush3.msra.mxu0 %v85_v16 }
  0x17   :  { %1160 = vmatprep.subr.mxu0 %v84_v17 }
  0x18   :  { %1161 = vmatpush3.msra.mxu0 %v84_v17 }
  0x19   :  { %1162 = vmatprep.subr.mxu0 %v83_v18 }
  0x1a   :  { %1163 = vmatpush3.msra.mxu0 %v83_v18 }
  0x1b   :  { %1164 = vmatprep.subr.mxu0 %v82_v19 }
  0x1c   :  { %1165 = vmatpush3.msra.mxu0 %v82_v19 }
  0x1d   :  { %1166 = vmatprep.subr.mxu0 %v81_v20 }
  0x1e   :  { %1167 = vmatpush3.msra.mxu0 %v81_v20 }
  0x1f   :  { %1168 = vmatprep.subr.mxu0 %v80_v21 }
  0x20   :  { %1169 = vmatpush3.msra.mxu0 %v80_v21 }
  0x21   :  { %1170 = vmatprep.subr.mxu0 %v79_v22 }
  0x22   :  { %1171 = vmatpush3.msra.mxu0 %v79_v22 }
  0x23   :  { %1172 = vmatprep.subr.mxu0 %v78_v23 }
  0x24   :  { %1173 = vmatpush3.msra.mxu0 %v78_v23 }
  0x25   :  { %1241 = vmatprep.subr.mxu0 %v1316_v2 }
  0x7d   :  { %v30_v26 = vpop.permute.xlu0 %29 }
  0x7e   :  { %vm54_vm1 = vcmp.eq.s32.totalorder %v30_v26, %v1449_v25 }
  0x7f   :  { %1174 = vmatprep.mubr.msk.f32.mxu0 %vm54_vm1, %v1318_v27 }
  0x81   :  { %v33_v28 = vpop.permute.xlu0 %32 }
  0x82   :  { %vm55_vm2 = vcmp.eq.s32.totalorder %v33_v28, %v1449_v25 }
  0x83   :  { %1175 = vmatmul.mubr.msk.f32.vlgmr.msra.gmra.mxu0 %vm55_vm2, %v1318_v27 }
  0x84   :  { %1242 = vmatpush3.msra.mxu0 %v1359_v3 }
  0x85   :  { %1243 = vmatprep.subr.mxu0 %v1316_v2 }
  0x86   :  { %1244 = vmatpush3.msra.mxu0 %v1365_v4 }
  0x87   :  { %1245 = vmatprep.subr.mxu0 %v1316_v2 }
  0x88   :  { %1246 = vmatpush3.msra.mxu0 %v1374_v6 }
  0x89   :  { %1247 = vmatprep.subr.mxu0 %v1316_v2 }
  0x8a   :  { %1248 = vmatpush3.msra.mxu0 %v1389_v9 }
  0x8b   :  { %1263 = vmatprep.subr.mxu0 %v1316_v2 }
  0xc9   :  { %v284_v30 = vpop.f32.mrf.mxu1 }
  0xca   :  { %v285_v31 = vadd.f32 %v1466_v29, %v284_v30 }
  0xcb   :  { %v1196_v32 = vpop.f32.mrf.mxu1 }
  0xcc   :  { %294 = vrot.lane.b32.xlu1 %v285_v31, %s1319_s12 }
 0x13e   :  { %v295_v39 = vpop.permute.xlu1 %294 }
 0x143   :  { %v1176_v33 = vpop.f32.mrf.mxu0 }
 0x145   :  { %v160_v34 = vpop.f32.mrf.mxu0 }
 0x146   :  { %v288_v35 = vadd.f32 %v285_v31, %v160_v34 }
 0x148   :  { %v289_v36 = vmul.f32 0.5, %v288_v35 }
 0x14a   :  { %1283 = vtanh.f32 %v289_v36 }
 0x157   :  { %v1284_v37 = vpop.eup %1283 }
 0x158   :  { %v291_v38 = vmul.f32 0.5, %v1284_v37 }
 0x15a   :  { %v292_v40 = vadd.f32 0.5, %v291_v38 }
 0x15c   :  { %v297_v41 = vmul.f32 %v295_v39, %v292_v40 }
 0x15e   :  { %299 = vrot.lane.b32.xlu1 %v297_v41, %s1319_s12 }
 0x162   :  { %206 = vperm.xlu1 %1282, %v204_v42  }
 0x1d0   :  { %v300_v43 = vpop.permute.xlu1 %299 }
 0x1d1   :  { %v302_v44 = vadd.f32 %v300_v43, %v160_v34 }
 0x1d3   :  { %1285 = vtanh.f32 %v302_v44 }
 0x1dd   :  { %v1476_v49 = vpop.permute.xlu1 %206 }
 0x1de   :  { %vm315_vm3 = vcmp.ge.s32.totalorder %v1476_v49, 0  ;;  %vm419_vm5 = vcmp.ge.s32.totalorder %v1476_v49, 1  ;;  %vm523_vm8 = vcmp.ge.s32.totalorder %v1476_v49, 2  ;;  %vm627_vm9 = vcmp.ge.s32.totalorder %v1476_v49, 3 }
 0x1df   :  { %vm731_vm13 = vcmp.ge.s32.totalorder %v1476_v49, 4  ;;  %vm835_vm15 = vcmp.ge.s32.totalorder %v1476_v49, 5  ;;  %vm1043_vm1 = vcmp.ge.s32.totalorder %v1476_v49, 7 }
 0x1e0   :  { %v1286_v45 = vpop.eup %1285 }
 0x1e1   :  { %v304_v46 = vsub.f32 0.0, %v1286_v45 }
 0x1e3   :  { %306 = vrot.lane.b32.xlu0 %v304_v46, %s1320_s13 }
 0x255   :  { %v307_v47 = vpop.permute.xlu0 %306 }
 0x256   :  { %v309_v48 = vmul.f32 %v307_v47, %v292_v40 }
 0x258   :  { %311 = vrot.lane.b32.xlu0 %v309_v48, %s1321_s14 }
 0x2ca   :  { %v312_v50 = vpop.permute.xlu0 %311 }
 0x2cb   :  { %v314_v51 = vadd.f32 %v1286_v45, %v312_v50 }
 0x2cd   :  { %v316_v52 = vsel %vm315_vm3, %v314_v51, 0.0 }
 0x2ce   :  { %318 = vrot.lane.b32.xlu1 %v316_v52, %s1319_s12 }
 0x340   :  { %v319_v53 = vpop.permute.xlu1 %318 }
 0x341   :  { %1206 = vmatmul.mubr.msk.f32.vlgmr.msra.gmra.mxu1 %vm214_vm4, %v319_v53 }
 0x342   :  { %1209 = vmatpush3.msra.mxu1 %v1359_v3  ;;  %1216 = vmatprep.mubr.msk.f32.mxu1 %vm1317_vm0, %v1316_v2 }
 0x343   :  { %1210 = vmatprep.subr.mxu1 %v1316_v2 }
 0x344   :  { %1211 = vmatpush3.msra.mxu1 %v1365_v4 }
 0x345   :  { %1212 = vmatprep.subr.mxu1 %v1316_v2 }
 0x346   :  { %1213 = vmatpush3.msra.mxu1 %v1374_v6 }
 0x347   :  { %1214 = vmatprep.subr.mxu1 %v1316_v2 }
 0x348   :  { %1215 = vmatpush3.msra.mxu1 %v1389_v9 }
 0x349   :  { %1219 = vmatprep.subr.mxu1 %v1316_v2 }
 0x401   :  { %v388_v54 = vpop.f32.mrf.mxu1 }
 0x402   :  { %v389_v55 = vadd.f32 %v1466_v29, %v388_v54 }
 0x403   :  { %v1207_v56 = vpop.f32.mrf.mxu1 }
 0x404   :  { %398 = vrot.lane.b32.xlu0 %v389_v55, %s1319_s12  ;;  %v392_v57 = vadd.f32 %v1176_v33, %v389_v55 }
 0x406   :  { %v393_v58 = vmul.f32 0.5, %v392_v57 }
 0x408   :  { %1287 = vtanh.f32 %v393_v58 }
 0x415   :  { %v1288_v59 = vpop.eup %1287 }
 0x416   :  { %v395_v60 = vmul.f32 0.5, %v1288_v59 }
 0x418   :  { %v396_v61 = vadd.f32 0.5, %v395_v60 }
 0x476   :  { %v399_v62 = vpop.permute.xlu0 %398 }
 0x477   :  { %v401_v63 = vmul.f32 %v399_v62, %v396_v61 }
 0x479   :  { %403 = vrot.lane.b32.xlu1 %v401_v63, %s1319_s12 }
 0x4eb   :  { %v404_v0 = vpop.permute.xlu1 %403 }
 0x4ec   :  { %v406_v1 = vadd.f32 %v1176_v33, %v404_v0 }
 0x4ee   :  { %1289 = vtanh.f32 %v406_v1  ;;  %v25_v1 = vld [vmem:[%s1624_s0 + $0x28] sm:$0xff] }
 0x4fb   :  { %v1290_v5 = vpop.eup %1289 }
 0x4fc   :  { %v408_v7 = vsub.f32 %v316_v52, %v1290_v5 }
 0x4fe   :  { %410 = vrot.lane.b32.xlu0 %v408_v7, %s1320_s13 }
 0x570   :  { %v411_v8 = vpop.permute.xlu0 %410 }
 0x571   :  { %v413_v10 = vmul.f32 %v411_v8, %v396_v61  ;;  %v24_v61 = vld [vmem:[%s1624_s0 + $0x20] sm:$0xff] }
 0x573   :  { %415 = vrot.lane.b32.xlu1 %v413_v10, %s1321_s14 }
 0x577   :  { %35 = vperm.xlu1 %1282, %v22_v11  }
 0x5e5   :  { %v416_v12 = vpop.permute.xlu1 %415 }
 0x5e6   :  { %v418_v13 = vadd.f32 %v1290_v5, %v416_v12 }
 0x5e8   :  { %v420_v14 = vsel %vm419_vm5, %v418_v13, %v316_v52 }
 0x5e9   :  { %422 = vrot.lane.b32.xlu0 %v420_v14, %s1319_s12 }
 0x5ed   :  { %38 = vperm.xlu0 %1281, %v23_v15  }
 0x5f2   :  { %v36_v16 = vpop.permute.xlu1 %35 }
 0x5f3   :  { %vm56_vm6 = vcmp.eq.s32.totalorder %v36_v16, %v1449_v25 }
 0x5f4   :  { %1177 = vmatprep.mubr.msk.f32.mxu0 %vm56_vm6, %v1318_v27 }
 0x65b   :  { %v423_v17 = vpop.permute.xlu0 %422 }
 0x65c   :  { %1217 = vmatmul.mubr.msk.f32.vlgmr.msra.gmra.mxu1 %vm214_vm4, %v423_v17 }
 0x65d   :  { %1220 = vmatpush3.msra.mxu1 %v1359_v3  ;;  %1227 = vmatprep.mubr.msk.f32.mxu1 %vm1317_vm0, %v1316_v2 }
 0x65e   :  { %1221 = vmatprep.subr.mxu1 %v1316_v2 }
 0x65f   :  { %1222 = vmatpush3.msra.mxu1 %v1365_v4 }
 0x660   :  { %1223 = vmatprep.subr.mxu1 %v1316_v2 }
 0x661   :  { %1224 = vmatpush3.msra.mxu1 %v1374_v6 }
 0x662   :  { %1225 = vmatprep.subr.mxu1 %v1316_v2 }
 0x663   :  { %1226 = vmatpush3.msra.mxu1 %v1389_v9 }
 0x664   :  { %1230 = vmatprep.subr.mxu1 %v1316_v2 }
 0x668   :  { %v39_v18 = vpop.permute.xlu0 %38 }
 0x669   :  { %vm57_vm7 = vcmp.eq.s32.totalorder %v39_v18, %v1449_v25 }
 0x66a   :  { %1178 = vmatmul.mubr.msk.f32.gmra.mxu0 %vm57_vm7, %v1318_v27 }
 0x71c   :  { %v492_v19 = vpop.f32.mrf.mxu1 }
 0x71d   :  { %v493_v20 = vadd.f32 %v1466_v29, %v492_v19 }
 0x71e   :  { %v1218_v21 = vpop.f32.mrf.mxu1 }
 0x71f   :  { %502 = vrot.lane.b32.xlu1 %v493_v20, %s1319_s12 }
 0x72a   :  { %v1179_v22 = vpop.f32.mrf.mxu0 }
 0x72c   :  { %v170_v23 = vpop.f32.mrf.mxu0 }
 0x72d   :  { %v496_v24 = vadd.f32 %v493_v20, %v170_v23 }
 0x72f   :  { %v497_v26 = vmul.f32 0.5, %v496_v24 }
 0x731   :  { %1291 = vtanh.f32 %v497_v26 }
 0x73e   :  { %v1292_v28 = vpop.eup %1291 }
 0x73f   :  { %v499_v30 = vmul.f32 0.5, %v1292_v28  ;;  %v26_v28 = vld [vmem:[%s1624_s0 + $0x30] sm:$0xff] }
 0x741   :  { %v500_v31 = vadd.f32 0.5, %v499_v30 }
 0x791   :  { %v503_v32 = vpop.permute.xlu1 %502 }
 0x792   :  { %v505_v33 = vmul.f32 %v503_v32, %v500_v31  ;;  %v27_v32 = vld [vmem:[%s1624_s0 + $0x38] sm:$0xff] }
 0x794   :  { %507 = vrot.lane.b32.xlu0 %v505_v33, %s1319_s12 }
 0x806   :  { %v508_v34 = vpop.permute.xlu0 %507 }
 0x807   :  { %v510_v35 = vadd.f32 %v508_v34, %v170_v23 }
 0x809   :  { %1293 = vtanh.f32 %v510_v35 }
 0x816   :  { %v1294_v36 = vpop.eup %1293 }
 0x817   :  { %v512_v37 = vsub.f32 %v420_v14, %v1294_v36 }
 0x819   :  { %514 = vrot.lane.b32.xlu1 %v512_v37, %s1320_s13 }
 0x88b   :  { %v515_v38 = vpop.permute.xlu1 %514 }
 0x88c   :  { %v517_v39 = vmul.f32 %v515_v38, %v500_v31 }
 0x88e   :  { %519 = vrot.lane.b32.xlu0 %v517_v39, %s1321_s14 }
 0x900   :  { %v520_v40 = vpop.permute.xlu0 %519 }
 0x901   :  { %v522_v41 = vadd.f32 %v1294_v36, %v520_v40 }
 0x903   :  { %v524_v42 = vsel %vm523_vm8, %v522_v41, %v420_v14 }
 0x904   :  { %526 = vrot.lane.b32.xlu1 %v524_v42, %s1319_s12 }
 0x976   :  { %v527_v43 = vpop.permute.xlu1 %526 }
 0x977   :  { %1228 = vmatmul.mubr.msk.f32.vlgmr.msra.gmra.mxu1 %vm214_vm4, %v527_v43 }
 0x978   :  { %1231 = vmatpush3.msra.mxu1 %v1359_v3  ;;  %1238 = vmatprep.mubr.msk.f32.mxu1 %vm1317_vm0, %v1316_v2 }
 0x979   :  { %1232 = vmatprep.subr.mxu1 %v1316_v2 }
 0x97a   :  { %1233 = vmatpush3.msra.mxu1 %v1365_v4 }
 0x97b   :  { %1234 = vmatprep.subr.mxu1 %v1316_v2 }
 0x97c   :  { %1235 = vmatpush3.msra.mxu1 %v1374_v6 }
 0x97d   :  { %1236 = vmatprep.subr.mxu1 %v1316_v2 }
 0x97e   :  { %1237 = vmatpush3.msra.mxu1 %v1389_v9 }
 0x97f   :  { %1252 = vmatprep.subr.mxu1 %v1316_v2 }
 0xa37   :  { %v596_v44 = vpop.f32.mrf.mxu1 }
 0xa38   :  { %v597_v45 = vadd.f32 %v1466_v29, %v596_v44 }
 0xa39   :  { %v1229_v46 = vpop.f32.mrf.mxu1 }
 0xa3a   :  { %606 = vrot.lane.b32.xlu0 %v597_v45, %s1319_s12  ;;  %v600_v47 = vadd.f32 %v1179_v22, %v597_v45 }
 0xa3c   :  { %v601_v48 = vmul.f32 0.5, %v600_v47 }
 0xa3e   :  { %1295 = vtanh.f32 %v601_v48 }
 0xa4b   :  { %v1296_v50 = vpop.eup %1295 }
 0xa4c   :  { %v603_v51 = vmul.f32 0.5, %v1296_v50 }
 0xa4e   :  { %v604_v52 = vadd.f32 0.5, %v603_v51 }
 0xaac   :  { %v607_v53 = vpop.permute.xlu0 %606 }
 0xaad   :  { %v609_v54 = vmul.f32 %v607_v53, %v604_v52 }
 0xaaf   :  { %611 = vrot.lane.b32.xlu1 %v609_v54, %s1319_s12 }
 0xb21   :  { %v612_v55 = vpop.permute.xlu1 %611 }
 0xb22   :  { %v614_v56 = vadd.f32 %v1179_v22, %v612_v55 }
 0xb24   :  { %1297 = vtanh.f32 %v614_v56 }
 0xb31   :  { %v1298_v57 = vpop.eup %1297 }
 0xb32   :  { %v616_v58 = vsub.f32 %v524_v42, %v1298_v57 }
 0xb34   :  { %618 = vrot.lane.b32.xlu0 %v616_v58, %s1320_s13 }
 0xba6   :  { %v619_v59 = vpop.permute.xlu0 %618 }
 0xba7   :  { %v621_v60 = vmul.f32 %v619_v59, %v604_v52 }
 0xba9   :  { %623 = vrot.lane.b32.xlu1 %v621_v60, %s1321_s14 }
 0xbad   :  { %41 = vperm.xlu1 %1282, %v24_v61  }
 0xc1b   :  { %v624_v62 = vpop.permute.xlu1 %623 }
 0xc1c   :  { %v626_v63 = vadd.f32 %v1298_v57, %v624_v62 }
 0xc1e   :  { %v628_v0 = vsel %vm627_vm9, %v626_v63, %v524_v42 }
 0xc1f   :  { %630 = vrot.lane.b32.xlu0 %v628_v0, %s1319_s12 }
 0xc23   :  { %44 = vperm.xlu0 %1281, %v25_v1  }
 0xc28   :  { %v42_v5 = vpop.permute.xlu1 %41 }
 0xc29   :  { %vm58_vm10 = vcmp.eq.s32.totalorder %v42_v5, %v1449_v25 }
 0xc2a   :  { %1180 = vmatprep.mubr.msk.f32.mxu0 %vm58_vm10, %v1318_v27 }
 0xc91   :  { %v631_v7 = vpop.permute.xlu0 %630 }
 0xc92   :  { %1239 = vmatmul.mubr.msk.f32.vlgmr.msra.gmra.mxu1 %vm214_vm4, %v631_v7 }
 0xc93   :  { %1253 = vmatpush3.msra.mxu1 %v1359_v3  ;;  %1260 = vmatprep.mubr.msk.f32.mxu1 %vm1317_vm0, %v1316_v2 }
 0xc94   :  { %1254 = vmatprep.subr.mxu1 %v1316_v2 }
 0xc95   :  { %1255 = vmatpush3.msra.mxu1 %v1365_v4 }
 0xc96   :  { %1256 = vmatprep.subr.mxu1 %v1316_v2 }
 0xc97   :  { %1257 = vmatpush3.msra.mxu1 %v1374_v6 }
 0xc98   :  { %1258 = vmatprep.subr.mxu1 %v1316_v2 }
 0xc99   :  { %1259 = vmatpush3.msra.mxu1 %v1389_v9 }
 0xc9e   :  { %v45_v8 = vpop.permute.xlu0 %44 }
 0xc9f   :  { %vm59_vm11 = vcmp.eq.s32.totalorder %v45_v8, %v1449_v25 }
 0xca0   :  { %1181 = vmatmul.mubr.msk.f32.gmra.mxu0 %vm59_vm11, %v1318_v27 }
 0xd52   :  { %v700_v10 = vpop.f32.mrf.mxu1 }
 0xd53   :  { %v701_v11 = vadd.f32 %v1466_v29, %v700_v10 }
 0xd54   :  { %v1240_v12 = vpop.f32.mrf.mxu1 }
 0xd55   :  { %710 = vrot.lane.b32.xlu1 %v701_v11, %s1319_s12 }
 0xd60   :  { %v1182_v13 = vpop.f32.mrf.mxu0 }
 0xd62   :  { %v180_v14 = vpop.f32.mrf.mxu0 }
 0xd63   :  { %v704_v15 = vadd.f32 %v701_v11, %v180_v14 }
 0xd65   :  { %v705_v16 = vmul.f32 0.5, %v704_v15 }
 0xd67   :  { %1299 = vtanh.f32 %v705_v16 }
 0xd74   :  { %v1300_v17 = vpop.eup %1299 }
 0xd75   :  { %v707_v18 = vmul.f32 0.5, %v1300_v17 }
 0xd77   :  { %v708_v19 = vadd.f32 0.5, %v707_v18 }
 0xdc7   :  { %v711_v20 = vpop.permute.xlu1 %710 }
 0xdc8   :  { %v713_v21 = vmul.f32 %v711_v20, %v708_v19 }
 0xdca   :  { %715 = vrot.lane.b32.xlu0 %v713_v21, %s1319_s12 }
 0xe3c   :  { %v716_v22 = vpop.permute.xlu0 %715 }
 0xe3d   :  { %v718_v23 = vadd.f32 %v716_v22, %v180_v14 }
 0xe3f   :  { %1301 = vtanh.f32 %v718_v23 }
 0xe4c   :  { %v1302_v24 = vpop.eup %1301 }
 0xe4d   :  { %v720_v26 = vsub.f32 %v628_v0, %v1302_v24 }
 0xe4f   :  { %722 = vrot.lane.b32.xlu1 %v720_v26, %s1320_s13 }
 0xe53   :  { %47 = vperm.xlu1 %1282, %v26_v28  }
 0xec1   :  { %v723_v30 = vpop.permute.xlu1 %722 }
 0xec2   :  { %v725_v31 = vmul.f32 %v723_v30, %v708_v19 }
 0xec4   :  { %727 = vrot.lane.b32.xlu0 %v725_v31, %s1321_s14 }
 0xec8   :  { %50 = vperm.xlu0 %1281, %v27_v32  }
 0xece   :  { %v48_v33 = vpop.permute.xlu1 %47 }
 0xecf   :  { %vm60_vm12 = vcmp.eq.s32.totalorder %v48_v33, %v1449_v25 }
 0xed0   :  { %1183 = vmatprep.mubr.msk.f32.mxu0 %vm60_vm12, %v1318_v27 }
 0xf36   :  { %v728_v34 = vpop.permute.xlu0 %727 }
 0xf37   :  { %v730_v35 = vadd.f32 %v1302_v24, %v728_v34 }
 0xf39   :  { %v732_v36 = vsel %vm731_vm13, %v730_v35, %v628_v0 }
 0xf3a   :  { %734 = vrot.lane.b32.xlu1 %v732_v36, %s1319_s12 }
 0xf43   :  { %v51_v37 = vpop.permute.xlu0 %50 }
 0xf44   :  { %vm61_vm14 = vcmp.eq.s32.totalorder %v51_v37, %v1449_v25 }
 0xf45   :  { %1184 = vmatmul.mubr.msk.f32.gmra.mxu0 %vm61_vm14, %v1318_v27 }
 0xf46   :  { %1249 = vmatprep.mubr.msk.f32.mxu0 %vm1317_vm0, %v1316_v2 }
 0xfac   :  { %v735_v38 = vpop.permute.xlu1 %734 }
 0xfad   :  { %1250 = vmatmul.mubr.msk.f32.vlgmr.msra.gmra.mxu0 %vm214_vm4, %v735_v38 }
 0xfae   :  { %1264 = vmatpush3.msra.mxu0 %v1359_v3  ;;  %1271 = vmatprep.mubr.msk.f32.mxu0 %vm1317_vm0, %v1316_v2  ;;  %vm939_vm0 = vcmp.ge.s32.totalorder %v1476_v49, 6 }
 0xfaf   :  { %1265 = vmatprep.subr.mxu0 %v1316_v2 }
 0xfb0   :  { %1266 = vmatpush3.msra.mxu0 %v1365_v4 }
 0xfb1   :  { %1267 = vmatprep.subr.mxu0 %v1316_v2 }
 0xfb2   :  { %1268 = vmatpush3.msra.mxu0 %v1374_v6 }
 0xfb3   :  { %1269 = vmatprep.subr.mxu0 %v1316_v2 }
 0xfb4   :  { %1270 = vmatpush3.msra.mxu0 %v1389_v9 }
0x1005   :  { %v1593_v25 = vpop.f32.mrf.mxu0 }
0x1007   :  { %v190_v27 = vpop.f32.mrf.mxu0 }
0x106d   :  { %v804_v39 = vpop.f32.mrf.mxu0 }
0x106e   :  { %v805_v3 = vadd.f32 %v1466_v29, %v804_v39 }
0x106f   :  { %v1251_v40 = vpop.f32.mrf.mxu0 }
0x1070   :  { %814 = vrot.lane.b32.xlu0 %v805_v3, %s1319_s12  ;;  %v808_v41 = vadd.f32 %v1182_v13, %v805_v3 }
0x1072   :  { %v809_v42 = vmul.f32 0.5, %v808_v41 }
0x1074   :  { %1303 = vtanh.f32 %v809_v42 }
0x1081   :  { %v1304_v4 = vpop.eup %1303 }
0x1082   :  { %v811_v43 = vmul.f32 0.5, %v1304_v4 }
0x1084   :  { %v812_v44 = vadd.f32 0.5, %v811_v43 }
0x10e2   :  { %v815_v6 = vpop.permute.xlu0 %814 }
0x10e3   :  { %v817_v45 = vmul.f32 %v815_v6, %v812_v44 }
0x10e5   :  { %819 = vrot.lane.b32.xlu1 %v817_v45, %s1319_s12 }
0x1157   :  { %v820_v2 = vpop.permute.xlu1 %819 }
0x1158   :  { %v822_v9 = vadd.f32 %v1182_v13, %v820_v2 }
0x115a   :  { %1305 = vtanh.f32 %v822_v9 }
0x1167   :  { %v1306_v46 = vpop.eup %1305 }
0x1168   :  { %v824_v47 = vsub.f32 %v732_v36, %v1306_v46 }
0x116a   :  { %826 = vrot.lane.b32.xlu0 %v824_v47, %s1320_s13 }
0x11dc   :  { %v827_v48 = vpop.permute.xlu0 %826 }
0x11dd   :  { %v829_v50 = vmul.f32 %v827_v48, %v812_v44 }
0x11df   :  { %831 = vrot.lane.b32.xlu1 %v829_v50, %s1321_s14 }
0x1251   :  { %v832_v51 = vpop.permute.xlu1 %831 }
0x1252   :  { %v834_v52 = vadd.f32 %v1306_v46, %v832_v51 }
0x1254   :  { %v836_v53 = vsel %vm835_vm15, %v834_v52, %v732_v36 }
0x1255   :  { %838 = vrot.lane.b32.xlu0 %v836_v53, %s1319_s12 }
0x12c7   :  { %v839_v54 = vpop.permute.xlu0 %838 }
0x12c8   :  { %1261 = vmatmul.mubr.msk.f32.vlgmr.msra.gmra.mxu1 %vm214_vm4, %v839_v54 }
0x1388   :  { %v908_v55 = vpop.f32.mrf.mxu1 }
0x1389   :  { %v909_v56 = vadd.f32 %v1466_v29, %v908_v55 }
0x138a   :  { %v1262_v57 = vpop.f32.mrf.mxu1 }
0x138b   :  { %918 = vrot.lane.b32.xlu1 %v909_v56, %s1319_s12  ;;  %v912_v58 = vadd.f32 %v909_v56, %v190_v27 }
0x138d   :  { %v913_v59 = vmul.f32 0.5, %v912_v58 }
0x138f   :  { %1307 = vtanh.f32 %v913_v59 }
0x139c   :  { %v1308_v60 = vpop.eup %1307 }
0x139d   :  { %v915_v61 = vmul.f32 0.5, %v1308_v60 }
0x139f   :  { %v916_v62 = vadd.f32 0.5, %v915_v61 }
0x13fd   :  { %v919_v63 = vpop.permute.xlu1 %918 }
0x13fe   :  { %v921_v0 = vmul.f32 %v919_v63, %v916_v62 }
0x1400   :  { %923 = vrot.lane.b32.xlu0 %v921_v0, %s1319_s12 }
0x1472   :  { %v924_v1 = vpop.permute.xlu0 %923 }
0x1473   :  { %v926_v5 = vadd.f32 %v924_v1, %v190_v27 }
0x1475   :  { %1309 = vtanh.f32 %v926_v5 }
0x1482   :  { %v1310_v7 = vpop.eup %1309 }
0x1483   :  { %v928_v8 = vsub.f32 %v836_v53, %v1310_v7 }
0x1485   :  { %930 = vrot.lane.b32.xlu1 %v928_v8, %s1320_s13 }
0x14f7   :  { %v931_v10 = vpop.permute.xlu1 %930 }
0x14f8   :  { %v933_v11 = vmul.f32 %v931_v10, %v916_v62 }
0x14fa   :  { %935 = vrot.lane.b32.xlu0 %v933_v11, %s1321_s14 }
0x156c   :  { %v936_v12 = vpop.permute.xlu0 %935 }
0x156d   :  { %v938_v13 = vadd.f32 %v1310_v7, %v936_v12 }
0x156f   :  { %v940_v14 = vsel %vm939_vm0, %v938_v13, %v836_v53 }
0x1570   :  { %942 = vrot.lane.b32.xlu1 %v940_v14, %s1319_s12 }
0x15e2   :  { %v943_v15 = vpop.permute.xlu1 %942 }
0x15e3   :  { %1272 = vmatmul.mubr.msk.f32.vlgmr.msra.gmra.mxu0 %vm214_vm4, %v943_v15 }
0x16a3   :  { %v1012_v16 = vpop.f32.mrf.mxu0 }
0x16a4   :  { %v1013_v17 = vadd.f32 %v1466_v29, %v1012_v16 }
0x16a5   :  { %v1273_v18 = vpop.f32.mrf.mxu0 }
0x16a6   :  { %1022 = vrot.lane.b32.xlu0 %v1013_v17, %s1319_s12  ;;  %v1016_v19 = vadd.f32 %v1593_v25, %v1013_v17 }
0x16a8   :  { %v1017_v20 = vmul.f32 0.5, %v1016_v19 }
0x16aa   :  { %1311 = vtanh.f32 %v1017_v20 }
0x16b7   :  { %v1312_v21 = vpop.eup %1311 }
0x16b8   :  { %v1019_v22 = vmul.f32 0.5, %v1312_v21 }
0x16ba   :  { %v1020_v23 = vadd.f32 0.5, %v1019_v22 }
0x1718   :  { %v1023_v24 = vpop.permute.xlu0 %1022 }
0x1719   :  { %v1025_v26 = vmul.f32 %v1023_v24, %v1020_v23 }
0x171b   :  { %1027 = vrot.lane.b32.xlu1 %v1025_v26, %s1319_s12 }
0x178d   :  { %v1028_v28 = vpop.permute.xlu1 %1027 }
0x178e   :  { %v1030_v30 = vadd.f32 %v1593_v25, %v1028_v28 }
0x1790   :  { %1313 = vtanh.f32 %v1030_v30 }
0x179d   :  { %v1314_v31 = vpop.eup %1313 }
0x179e   :  { %v1032_v29 = vsub.f32 %v940_v14, %v1314_v31 }
0x17a0   :  { %1034 = vrot.lane.b32.xlu0 %v1032_v29, %s1320_s13 }
0x1812   :  { %v1035_v32 = vpop.permute.xlu0 %1034 }
0x1813   :  { %v1037_v33 = vmul.f32 %v1035_v32, %v1020_v23 }
0x1815   :  { %1039 = vrot.lane.b32.xlu1 %v1037_v33, %s1321_s14 }
0x1887   :  { %v1040_v34 = vpop.permute.xlu1 %1039 }
0x1888   :  { %v1042_v35 = vadd.f32 %v1314_v31, %v1040_v34 }
0x188a   :  { %v1044_v36 = vsel %vm1043_vm1, %v1042_v35, %v940_v14 }
0x188b   :  { %1046 = vrot.lane.b32.xlu0 %v1044_v36, %s1319_s12 }
0x18fd   :  { %v1047_v37 = vpop.permute.xlu0 %1046 }
0x18fe   :  { %1049 = vst.msk [vmem:[%s1629_s5] sm:$0xff] %vm214_vm4, %v1047_v37 }

</bundles_post_ra>
